<compile_context>
chip_gen: v7x
topology: tpu7x:2x2x1
jax: 0.10.0
libtpu: 0.0.40
codegen_flags: <defaults>
</compile_context>

<pallas_src>
import functools

import jax
import jax.numpy as jnp
from jax.experimental import pallas as pl
from jax.experimental.pallas import tpu as pltpu


def _round_up(x, m):
    return ((x + m - 1) // m) * m


def _vmem_bytes(c_in, c_out, k, tile_t, x_itemsize):
    """Rough VMEM footprint of one grid step (double-buffered blocks + temps)."""
    return (2 * c_in * tile_t * x_itemsize      # main x block, double-buffered
            + 2 * c_in * 128 * x_itemsize       # halo block, double-buffered
            + 2 * c_out * k * c_in * 2          # folded weights (bf16), double-buffered
            + 2 * c_out * 4                     # shift
            + 2 * c_out * 4                     # output block
            + c_in * (tile_t + 128) * 2         # xw (bf16) temp
            + k * c_in * tile_t * 2             # im2col rhs (bf16) temp
            + 2 * c_out * tile_t * 4)           # acc + y (f32) temps


def _cnnpool_kernel(x_ref, halo_ref, w_ref, shift_ref, out_ref, *,
                    K, tile_t, t_out, num_t, tiles_per_group):
    # x_ref:     (1, C_in, tile_t)     main T-tile (input dtype, cast here)
    # halo_ref:  (1, C_in, 128)        next 128 columns (halo for the K-1 tap overhang)
    # w_ref:     (C_out, K*C_in) bf16  conv weights, BN scale folded, taps folded into
    #                                  the contraction (row-block k holds tap k)
    # shift_ref: (C_out, 1) f32        folded conv-bias + BN shift
    # out_ref:   (1, 1, 1, C_out) f32  running max, resident across the T axis
    tt = pl.program_id(2)
    c_out = w_ref.shape[0]

    x_main = x_ref[0].astype(jnp.bfloat16)              # (C_in, tile_t)
    x_halo = halo_ref[0].astype(jnp.bfloat16)           # (C_in, 128)
    xw = jnp.concatenate([x_main, x_halo], axis=-1)     # (C_in, tile_t + 128)

    # im2col along sublanes: rhs[k*C_in + c, j] = x[c, tile_start + j + k]
    rhs = jnp.concatenate([xw[:, k:k + tile_t] for k in range(K)], axis=0)
    acc = jnp.dot(w_ref[...], rhs,
                  preferred_element_type=jnp.float32)   # (C_out, tile_t), one MXU pass

    y = jnp.maximum(acc + shift_ref[...], 0.0)          # bias/BN shift + ReLU (f32)

    @pl.when(tt == 0)
    def _():
        out_ref[...] = jnp.full(out_ref.shape, -jnp.inf, out_ref.dtype)

    def _update(y_block):
        tile_max = jnp.max(y_block, axis=-1).reshape(1, 1, 1, c_out)
        out_ref[...] = jnp.maximum(out_ref[...], tile_max)   # AdaptiveMaxPool1d(1)

    valid_last = t_out - (num_t - 1) * tile_t            # static, >= 1
    if t_out % tile_t == 0:
        _update(y)                                       # no invalid tail anywhere
    elif num_t == 1:
        _update(y[:, :valid_last])                       # single tile: always mask
    else:
        g = pl.program_id(1)
        gt = jnp.minimum(g * tiles_per_group + tt, num_t - 1)   # global T-tile index
        is_last = gt == num_t - 1

        @pl.when(is_last)
        def _():
            _update(y[:, :valid_last])                   # mask only on the last tile

        @pl.when(jnp.logical_not(is_last))
        def _():
            _update(y)                                   # interior tiles: no masking


def cnnpool_forward(x, conv_w, conv_b, bn_gamma, bn_beta, bn_mean, bn_var,
                    eps=1e-5, tile_t=None, n_groups=None):
    """x: (B, C_in, T); conv_w: (C_out, C_in, K); returns (B, C_out) f32."""
    x = jnp.asarray(x)
    B, C_in, T = x.shape
    C_out, _, K = conv_w.shape
    if T < K:
        raise ValueError(f"T={T} must be >= kernel_size={K}")
    if K > 129:
        raise ValueError(f"kernel_size={K} exceeds the 128-column halo window")
    T_out = T - K + 1

    # Per-generation VMEM capacity (64 MiB on v7x, 128 MiB on v5e/v6e).
    try:
        vmem_cap = int(pltpu.get_tpu_info().vmem_capacity_bytes)
    except Exception:
        vmem_cap = 64 * 2**20                     # conservative (v7x) fallback
    budget = (vmem_cap * 3) // 4

    if tile_t is None:
        tile_t = min(1024, _round_up(T_out, 128))
    tile_t = max(128, _round_up(tile_t, 128))
    while tile_t > 128 and 2 * _vmem_bytes(C_in, C_out, K, tile_t, x.dtype.itemsize) > budget:
        tile_t = max(128, _round_up(tile_t // 2, 128))

    num_t = -(-T_out // tile_t)
    if n_groups is None:
        n_groups = 1 if B >= 2 else min(2, num_t)   # keep both v7x TCs busy when B == 1
    n_groups = max(1, min(n_groups, num_t))
    tpg = -(-num_t // n_groups)                      # T-tiles per parallel group
    halo_max = -(-T // 128) - 1                      # last in-range 128-col block index

    # Fold conv bias + BatchNorm(eval) into a per-channel affine; fold scale into W and
    # fold the K taps into the contraction: w2[o, k*C_in + c] = scale[o] * W[o, c, k].
    scale = bn_gamma / jnp.sqrt(bn_var + eps)                                  # (C_out,)
    shift2d = ((conv_b - bn_mean) * scale + bn_beta).astype(jnp.float32).reshape(C_out, 1)
    w2 = (jnp.transpose(conv_w * scale[:, None, None], (0, 2, 1))
          .reshape(C_out, K * C_in).astype(jnp.bfloat16))

    kernel = functools.partial(_cnnpool_kernel, K=K, tile_t=tile_t, t_out=T_out,
                               num_t=num_t, tiles_per_group=tpg)

    vmem_est = _vmem_bytes(C_in, C_out, K, tile_t, x.dtype.itemsize)
    vmem_limit = int(min(max(32 * 2**20, 2 * vmem_est), budget))

    def x_idx(b, g, t):
        return (b, 0, jnp.minimum(g * tpg + t, num_t - 1))

    def halo_idx(b, g, t):
        gt = jnp.minimum(g * tpg + t, num_t - 1)
        # Block index in units of 128 columns; clamped indices only feed masked outputs.
        return (b, 0, jnp.minimum((gt + 1) * (tile_t // 128), halo_max))

    out4 = pl.pallas_call(
        kernel,
        out_shape=jax.ShapeDtypeStruct((B, n_groups, 1, C_out), jnp.float32),
        grid=(B, n_groups, tpg),
        in_specs=[
            pl.BlockSpec((1, C_in, tile_t), x_idx),                     # x main tile
            pl.BlockSpec((1, C_in, 128), halo_idx),                     # x halo columns
            pl.BlockSpec((C_out, K * C_in), lambda b, g, t: (0, 0)),    # folded weights
            pl.BlockSpec((C_out, 1), lambda b, g, t: (0, 0)),           # folded shift
        ],
        out_specs=pl.BlockSpec((1, 1, 1, C_out), lambda b, g, t: (b, g, 0, 0)),
        compiler_params=pltpu.CompilerParams(
            dimension_semantics=("parallel", "parallel", "arbitrary"),
            vmem_limit_bytes=vmem_limit),
        cost_estimate=pl.CostEstimate(
            flops=2 * B * n_groups * tpg * C_out * K * C_in * tile_t,
            transcendentals=0,
            bytes_accessed=(B * C_in * T * x.dtype.itemsize
                            + C_out * K * C_in * 2 + B * n_groups * C_out * 4)),
    )(x, x, w2, shift2d)

    # Reduce the per-group partial maxes (n_groups is 1 unless B == 1).
    return jnp.max(out4, axis=1).reshape(B, C_out)


def cnnpool_reference(x, conv_w, conv_b, bn_gamma, bn_beta, bn_mean, bn_var, eps=1e-5):
    """Pure-JAX f32 reference mirroring the PyTorch module (eval mode)."""
    y = jax.lax.conv_general_dilated(
        x, conv_w, window_strides=(1,), padding="VALID",
        dimension_numbers=("NCH", "OIH", "NCH"))
    y = y + conv_b[None, :, None]
    y = (y - bn_mean[None, :, None]) / jnp.sqrt(bn_var[None, :, None] + eps)
    y = y * bn_gamma[None, :, None] + bn_beta[None, :, None]
    y = jnp.maximum(y, 0.0)
    return jnp.max(y, axis=-1)


if __name__ == "__main__":
    # Small config consistent with the Wav2VecConfig fields used by the module.
    hidden_size = 32   # in_channels
    dim_feats = 16     # out_channels
    kernel_size = 3

    key = jax.random.PRNGKey(0)
    k_x, k_x2, k_w, k_b, k_g, k_bt, k_m, k_v = jax.random.split(key, 8)

    conv_w = 0.1 * jax.random.normal(k_w, (dim_feats, hidden_size, kernel_size), jnp.float32)
    conv_b = 0.1 * jax.random.normal(k_b, (dim_feats,), jnp.float32)
    bn_gamma = 1.0 + 0.1 * jax.random.normal(k_g, (dim_feats,), jnp.float32)
    bn_beta = 0.1 * jax.random.normal(k_bt, (dim_feats,), jnp.float32)
    bn_mean = 0.1 * jax.random.normal(k_m, (dim_feats,), jnp.float32)
    bn_var = jnp.abs(1.0 + 0.1 * jax.random.normal(k_v, (dim_feats,), jnp.float32))
    params = (conv_w, conv_b, bn_gamma, bn_beta, bn_mean, bn_var)

    # 1) Module-sized config (single T-tile path).
    x1 = jax.random.normal(k_x, (2, hidden_size, 16), dtype=jnp.float32)
    out1 = jax.block_until_ready(cnnpool_forward(x1, *params))
    ref1 = cnnpool_reference(x1, *params)
    assert out1.shape == (2, dim_feats), out1.shape
    # bf16 MXU inputs with f32 accumulation -> looser tolerance than pure f32.
    assert jnp.allclose(out1, ref1, atol=2e-2, rtol=2e-2), (out1, ref1)

    # 2) Multi-tile path (T-tiling + halo + last-tile masking), B >= 2 -> one group.
    x2 = jax.random.normal(k_x2, (2, hidden_size, 300), dtype=jnp.float32)
    out2 = jax.block_until_ready(cnnpool_forward(x2, *params, tile_t=128))
    ref2 = cnnpool_reference(x2, *params)
    assert jnp.allclose(out2, ref2, atol=2e-2, rtol=2e-2), (out2, ref2)

    # 3) B == 1 -> two parallel T-tile groups (both v7x cores get work); partial maxes
    #    reduced in the wrapper.
    x3 = x2[:1]
    out3 = jax.block_until_ready(cnnpool_forward(x3, *params, tile_t=128))
    ref3 = cnnpool_reference(x3, *params)
    assert jnp.allclose(out3, ref3, atol=2e-2, rtol=2e-2), (out3, ref3)

    print("KERNEL_OK")
</pallas_src>

<mosaic_0001>
module attributes {stable_mosaic.version = 11 : i64} {
  func.func @_cnnpool_kernel(%arg0: i32, %arg1: i32, %arg2: i32, %arg3: memref<1x32x128xf32, #tpu.memory_space<vmem>>, %arg4: memref<1x32x128xf32, #tpu.memory_space<vmem>>, %arg5: memref<16x96xbf16, #tpu.memory_space<vmem>>, %arg6: memref<16x1xf32, #tpu.memory_space<vmem>>, %arg7: memref<1x1x1x16xf32, #tpu.memory_space<vmem>>) attributes {dimension_semantics = [#tpu.dimension_semantics<parallel>, #tpu.dimension_semantics<parallel>, #tpu.dimension_semantics<arbitrary>], iteration_bounds = array<i64: 2, 1, 1>, scalar_prefetch = 0 : i64, scratch_operands = 0 : i64, tpu.core_type = #tpu.core_type<tc>, window_params = [{transform_indices = @transform_0, window_bounds = array<i64: 1, 32, 128>}, {transform_indices = @transform_1, window_bounds = array<i64: 1, 32, 128>}, {pipeline_mode = #tpu.pipeline_mode<synchronous>, transform_indices = @transform_2, window_bounds = array<i64: 16, 96>}, {pipeline_mode = #tpu.pipeline_mode<synchronous>, transform_indices = @transform_3, window_bounds = array<i64: 16, 1>}, {transform_indices = @transform_4, window_bounds = array<i64: 1, 1, 1, 16>}]} {
    %c0 = arith.constant 0 : index
    %c0_0 = arith.constant 0 : index
    %c0_1 = arith.constant 0 : index
    %0 = vector.load %arg3[%c0, %c0_0, %c0_1] : memref<1x32x128xf32, #tpu.memory_space<vmem>>, vector<1x32x128xf32>
    %1 = vector.shape_cast %0 : vector<1x32x128xf32> to vector<32x128xf32>
    %2 = arith.truncf %1 : vector<32x128xf32> to vector<32x128xbf16>
    %c0_2 = arith.constant 0 : index
    %c0_3 = arith.constant 0 : index
    %c0_4 = arith.constant 0 : index
    %3 = vector.load %arg4[%c0_2, %c0_3, %c0_4] : memref<1x32x128xf32, #tpu.memory_space<vmem>>, vector<1x32x128xf32>
    %4 = vector.shape_cast %3 : vector<1x32x128xf32> to vector<32x128xf32>
    %5 = arith.truncf %4 : vector<32x128xf32> to vector<32x128xbf16>
    %6 = tpu.concatenate %2, %5 in 1 : vector<32x128xbf16>, vector<32x128xbf16> -> vector<32x256xbf16>
    %7 = vector.extract_strided_slice %6 {offsets = [0, 0], sizes = [32, 128], strides = [1, 1]} : vector<32x256xbf16> to vector<32x128xbf16>
    %8 = vector.extract_strided_slice %6 {offsets = [0, 1], sizes = [32, 128], strides = [1, 1]} : vector<32x256xbf16> to vector<32x128xbf16>
    %9 = vector.extract_strided_slice %6 {offsets = [0, 2], sizes = [32, 128], strides = [1, 1]} : vector<32x256xbf16> to vector<32x128xbf16>
    %10 = tpu.concatenate %7, %8, %9 in 0 : vector<32x128xbf16>, vector<32x128xbf16>, vector<32x128xbf16> -> vector<96x128xbf16>
    %c0_5 = arith.constant 0 : index
    %c0_6 = arith.constant 0 : index
    %11 = vector.load %arg5[%c0_5, %c0_6] : memref<16x96xbf16, #tpu.memory_space<vmem>>, vector<16x96xbf16>
    %cst = arith.constant dense<0.000000e+00> : vector<16x128xf32>
    %12 = tpu.matmul %11, %10, %cst {dimension_numbers = #tpu.dot_dimension_numbers<[1], [0], [0], [1], [0, 0, 1, 1], [], []>} : vector<16x96xbf16>, vector<96x128xbf16>, vector<16x128xf32> -> vector<16x128xf32>
    %c0_7 = arith.constant 0 : index
    %c0_8 = arith.constant 0 : index
    %13 = vector.load %arg6[%c0_7, %c0_8] : memref<16x1xf32, #tpu.memory_space<vmem>>, vector<16x1xf32>
    %14 = vector.broadcast %13 : vector<16x1xf32> to vector<16x128xf32>
    %15 = arith.addf %12, %14 : vector<16x128xf32>
    %cst_9 = arith.constant 0.000000e+00 : f32
    %16 = vector.broadcast %cst_9 : f32 to vector<16x128xf32>
    %17 = arith.maximumf %15, %16 : vector<16x128xf32>
    %c0_i32 = arith.constant 0 : i32
    %18 = arith.cmpi eq, %arg2, %c0_i32 : i32
    %19 = arith.extui %18 : i1 to i32
    %c0_i32_10 = arith.constant 0 : i32
    %20 = arith.cmpi ne, %19, %c0_i32_10 : i32
    scf.if %20 {
      %cst_20 = arith.constant 0xFF800000 : f32
      %27 = vector.broadcast %cst_20 : f32 to vector<1x1x1x16xf32>
      %c0_21 = arith.constant 0 : index
      %c0_22 = arith.constant 0 : index
      %c0_23 = arith.constant 0 : index
      %c0_24 = arith.constant 0 : index
      %28 = vector.load %arg7[%c0_21, %c0_22, %c0_23, %c0_24] : memref<1x1x1x16xf32, #tpu.memory_space<vmem>>, vector<1x1x1x16xf32>
      tpu.vector_store %arg7[%c0_21, %c0_22, %c0_23, %c0_24], %27 {strides = array<i32>} : memref<1x1x1x16xf32, #tpu.memory_space<vmem>>, vector<1x1x1x16xf32>,
    } else {
    }
    %21 = vector.extract_strided_slice %17 {offsets = [0, 0], sizes = [16, 14], strides = [1, 1]} : vector<16x128xf32> to vector<16x14xf32>
    %cst_11 = arith.constant dense<0xFF800000> : vector<16xf32>
    %22 = vector.multi_reduction <maximumf>, %21, %cst_11 [1] : vector<16x14xf32> to vector<16xf32>
    %23 = vector.shape_cast %22 : vector<16xf32> to vector<1x1x1x16xf32>
    %c0_12 = arith.constant 0 : index
    %c0_13 = arith.constant 0 : index
    %c0_14 = arith.constant 0 : index
    %c0_15 = arith.constant 0 : index
    %24 = vector.load %arg7[%c0_12, %c0_13, %c0_14, %c0_15] : memref<1x1x1x16xf32, #tpu.memory_space<vmem>>, vector<1x1x1x16xf32>
    %25 = arith.maximumf %24, %23 : vector<1x1x1x16xf32>
    %c0_16 = arith.constant 0 : index
    %c0_17 = arith.constant 0 : index
    %c0_18 = arith.constant 0 : index
    %c0_19 = arith.constant 0 : index
    %26 = vector.load %arg7[%c0_16, %c0_17, %c0_18, %c0_19] : memref<1x1x1x16xf32, #tpu.memory_space<vmem>>, vector<1x1x1x16xf32>
    tpu.vector_store %arg7[%c0_16, %c0_17, %c0_18, %c0_19], %25 {strides = array<i32>} : memref<1x1x1x16xf32, #tpu.memory_space<vmem>>, vector<1x1x1x16xf32>,
    return
  }
  func.func @transform_0(%arg0: i32, %arg1: i32, %arg2: i32) -> (i32, i32, i32) {
    %c1_i32 = arith.constant 1 : i32
    %0 = arith.muli %arg1, %c1_i32 : i32
    %1 = arith.addi %0, %arg2 : i32
    %c0_i32 = arith.constant 0 : i32
    %2 = arith.minsi %1, %c0_i32 : i32
    %c0_i32_0 = arith.constant 0 : i32
    %c0_i32_1 = arith.constant 0 : i32
    return %arg0, %c0_i32_0, %2 : i32, i32, i32
  }
  func.func @transform_1(%arg0: i32, %arg1: i32, %arg2: i32) -> (i32, i32, i32) {
    %c1_i32 = arith.constant 1 : i32
    %0 = arith.muli %arg1, %c1_i32 : i32
    %1 = arith.addi %0, %arg2 : i32
    %c0_i32 = arith.constant 0 : i32
    %2 = arith.minsi %1, %c0_i32 : i32
    %c1_i32_0 = arith.constant 1 : i32
    %3 = arith.addi %2, %c1_i32_0 : i32
    %c1_i32_1 = arith.constant 1 : i32
    %4 = arith.muli %3, %c1_i32_1 : i32
    %c0_i32_2 = arith.constant 0 : i32
    %5 = arith.minsi %4, %c0_i32_2 : i32
    %c0_i32_3 = arith.constant 0 : i32
    %c0_i32_4 = arith.constant 0 : i32
    return %arg0, %c0_i32_3, %5 : i32, i32, i32
  }
  func.func @transform_2(%arg0: i32, %arg1: i32, %arg2: i32) -> (i32, i32) {
    %c0_i32 = arith.constant 0 : i32
    %c0_i32_0 = arith.constant 0 : i32
    %c0_i32_1 = arith.constant 0 : i32
    return %c0_i32, %c0_i32_0 : i32, i32
  }
  func.func @transform_3(%arg0: i32, %arg1: i32, %arg2: i32) -> (i32, i32) {
    %c0_i32 = arith.constant 0 : i32
    %c0_i32_0 = arith.constant 0 : i32
    %c0_i32_1 = arith.constant 0 : i32
    return %c0_i32, %c0_i32_0 : i32, i32
  }
  func.func @transform_4(%arg0: i32, %arg1: i32, %arg2: i32) -> (i32, i32, i32, i32) {
    %c0_i32 = arith.constant 0 : i32
    %c0_i32_0 = arith.constant 0 : i32
    %c0_i32_1 = arith.constant 0 : i32
    return %arg0, %arg1, %c0_i32, %c0_i32_0 : i32, i32, i32, i32
  }
}

</mosaic_0001>

<bundles_post_ra>
// kernel: tpu_custom_call.1
= control target key start
LH: loop header
LB: loop body
LE: loop exit
PB: predicated region body
PF: predicated region fallthrough
CT: control target
= control target key end

     0   :  { %9 = vsyncpa [#allocation3], 0  ;;  %s1124_s0 = inlined_call_operand.vmem [shape: f32[2,32,16], index: 0, kind: input, shape index: {}]   ;;  %s1125_s1 = inlined_call_operand.vmem [shape: f32[2,32,16], index: 1, kind: input, shape index: {}]   ;;  %s1126_s2 = inlined_call_operand.vmem [shape: bf16[16,96], index: 2, kind: input, shape index: {}]   ;;  %s1127_s3 = inlined_call_operand.vmem [shape: f32[16,1], index: 3, kind: input, shape index: {}]   ;;  %s1128_s4 = inlined_call_operand.hbm [shape: f32[2,1,1,16], index: 4, kind: output, shape index: {}]  }
   0x1   :  { %11 = vsyncpa [#allocation3 + $0x1], 0  ;;  %s967_s15 = smov 0   ;;  %s969_s16 = smov 0  }
   0x2   :  { %s971_s17 = smov 0   ;;  %s973_s18 = smov 0  }
   0x3   :  { %s975_s19 = smov 0   ;;  %s977_s20 = smov 0  }
   0x4 LB: > { %s750_s21 = sadd.s32 4294967295, %s932_s20   ;;  %s751_s22 = sadd.s32 4294967294, %s932_s20   ;;  %s932_s20 = sphi %s977_s20, %s17_s20   ;;  %s928_s19 = sphi %s975_s19, %s1135_s19   ;;  %s924_s18 = sphi %s973_s18, %s1134_s18   ;;  %s920_s17 = sphi %s971_s17, %s1133_s17   ;;  %s916_s16 = sphi %s969_s16, %s1132_s16   ;;  %s912_s15 = sphi %s967_s15, %s1131_s15  }
   0x5   : > { %s36_s23 = sadd.s32 1, %s928_s19  ;;  %s161_s24 = sadd.s32 1, %s920_s17 }
   0x6   : > { %p38_p0 = scmp.ge.s32.totalorder %s36_s23, 2  ;;  %p171_p1 = scmp.ne.s32.totalorder %s920_s17, %s916_s16 }
   0x7   : > { %p172_p2 = scmp.eq.s32.totalorder %s750_s21, 1  ;;  %p177_p3 = scmp.ne.s32.totalorder %s916_s16, %s912_s15 }
   0x8   : > { %s1137_s23 = smov (%p38_p0, %s36_s23), 0  ;;  %p178_p5 = scmp.eq.s32.totalorder %s751_s22, 1 }
   0x9   : > { %p1007_p4 = por %p172_p2, %p171_p1  ;;  %s156_s26 = ssub.s32 %s928_s19, %s1137_s23 }
   0xa   : > { %p754_p6 = scmp.ge.s32.totalorder %s932_s20, 1  ;;  %p159_p7 = scmp.eq.s32.totalorder %s156_s26, 0 }
   0xb   : > { %p1014_p8 = por %p178_p5, %p177_p3  ;;  %p242_p9 = scmp.lt.s32.totalorder %s932_s20, 3 }
   0xc   : > { %s1020_s28 = scalar_select %p159_p7, %s920_s17, %s161_s24  }
   0xd   : > { %p243_p10 = pnand %p754_p6, %p242_p9 }
   0xe   : > { %p290_p11 = scmp.lt.s32.totalorder (!%p243_p10), %s924_s18, 1  ;;  %v934_v0 = vmov (!%p243_p10), 0.0   ;;  %s935_s11 = smov (!%p243_p10), 127   ;;  %vm936_vm0 = vmmov (!%p243_p10), 0   ;;  %v938_v13 = vmov (!%p243_p10), 0   ;;  %v367_v14 = vld [vmem:[%s1127_s3 + $0x8] sm:$0xff] (!%p243_p10)  ;;  %v446_v41 = vlaneseq (!%p243_p10) }
   0xf   : > { %246 = sbr.rel (%p243_p10) target bundleno = 692 (0x2b4), region = 36  ;;  %773 = vmatprep.subr.bf16.mxu0 (!%p243_p10), %v934_v0  ;;  %785 = vmatprep.mubr.msk.bf16.mxu0 (!%p243_p10), %vm936_vm0, %v934_v0  ;;  %s937_s12 = smov (!%p243_p10), 126   ;;  %v366_v15 = vld [vmem:[%s1127_s3] sm:$0xff] (!%p243_p10)  ;;  %vm346_vm1 = vcmask (!%p243_p10), 1039360   ;;  %vm359_vm2 = vcmask (!%p243_p10), 1031168   ;;  %vm383_vm3 = vcmask (!%p243_p10), 785408  }
  0x10   : > { %852 = vset.pattern.permute.xlu1 (!%p243_p10), %v938_v13  ;;  %851 = vset.pattern.permute.xlu0 (!%p243_p10), %v938_v13  ;;  %v853_v28 = vld [vmem:[%s1126_s2] sm:$0xff] (!%p243_p10)   ;;  %vm436_vm4 = vcmask (!%p243_p10), 113664   ;;  %v939_v42 = vmov (!%p243_p10), 1966171168   ;;  %v1040_v44 = vshrl.u32 (!%p243_p10), %v446_v41, 7  ;;  %vm434_vm5 = vcmask (!%p243_p10), 122880  }
  0x11   : > { %v515_v43 = vunpack.c.l.s4 (!%p243_p10), %v939_v42  ;;  %vm625_vm6 = vcmask (!%p243_p10), 130112   ;;  %s761_s5 = sshll.u32 (!%p243_p10), %s924_s18, 4 }
  0x12   : > { %v448_v46 = vsub.s32 (!%p243_p10), 0, %v1040_v44  ;;  %v452_v47 = vsub.s32 (!%p243_p10), 1, %v1040_v44  ;;  %v456_v48 = vsub.s32 (!%p243_p10), 2, %v1040_v44  ;;  %v460_v49 = vsub.s32 (!%p243_p10), 3, %v1040_v44  ;;  %s1076_s9 = scalar_lea.hbm (!%p243_p10), %s1128_s4, %s761_s5 }
  0x13   : > { %v516_v45 = vunpack.c.0.s8 (!%p243_p10), %v515_v43  ;;  %v464_v50 = vsub.s32 (!%p243_p10), 4, %v1040_v44  ;;  %v468_v51 = vsub.s32 (!%p243_p10), 5, %v1040_v44  ;;  %v472_v52 = vsub.s32 (!%p243_p10), 6, %v1040_v44 }
  0x14   : > { %v476_v53 = vsub.s32 (!%p243_p10), 7, %v1040_v44 }
  0x15   : > { %v1051_v55 = vsub.s32 (!%p243_p10), %v516_v45, %v1040_v44 }
  0x16   : > { %s291_s29 = scalar_select %p290_p11, %s924_s18, 1 }
  0x17   : > { %s941_s18 = smov [#allocation2]  }
  0x18   : > { %s764_s30 = sshll.u32 %s291_s29, 5  ;;  %s285_s29 = sand.u32 1, %s916_s16  }
  0x19   : > { %s297_s7 = scalar_lea.vmem %s1124_s0, %s764_s30  ;;  %s314_s10 = scalar_lea.vmem %s1125_s1, %s764_s30 }
  0x1a   : > { %v324_v1 = vld [vmem:[%s297_s7 + $0x10] sm:$0xff]  ;;  %v325_v2 = vld [vmem:[%s297_s7 + $0x18] sm:$0xff]  ;;  %v322_v3 = vld [vmem:[%s297_s7] sm:$0xff]  ;;  %s286_s30 = scalar_lea.vmem [#allocation2], %s285_s29 }
  0x1b   : > { %v327_v4 = vpack.c.bf16 %v325_v2, %v324_v1  ;;  %v323_v5 = vld [vmem:[%s297_s7 + $0x8] sm:$0xff]  ;;  %v330_v6 = vld [vmem:[%s314_s10 + $0x10] sm:$0xff]  ;;  %v331_v7 = vld [vmem:[%s314_s10 + $0x18] sm:$0xff]  ;;  %s659_s6 = sshll.u32 %s286_s30, 4  ;;  %s1078_s6 = int_to_ptr.vmem [resolvable:$true] %s659_s6 }
  0x1c   : > { %v326_v8 = vpack.c.bf16 %v323_v5, %v322_v3  ;;  %v328_v9 = vld [vmem:[%s314_s10] sm:$0xff]  ;;  %v329_v10 = vld [vmem:[%s314_s10 + $0x8] sm:$0xff]  ;;  %v333_v11 = vpack.c.bf16 %v331_v7, %v330_v6  ;;  %s646_s10 = scalar_lea.sflag [#allocation3], %s285_s29 }
  0x1d   : > { %342 = vrot.lane.b32.xlu1 %v327_v4, %s935_s11  ;;  %v332_v12 = vpack.c.bf16 %v329_v10, %v328_v9 }
  0x1e   : > { %338 = vrot.lane.b32.xlu0 %v326_v8, %s935_s11  ;;  %774 = vmatpush3.bf16.msra.mxu0 %v326_v8 }
  0x1f   : > { %775 = vmatprep.subr.bf16.mxu0 %v934_v0 }
  0x21   : > { %344 = vrot.lane.b32.xlu1 %v333_v11, %s935_s11 }
  0x22   : > { %340 = vrot.lane.b32.xlu0 %v332_v12, %s935_s11  ;;  %776 = vmatpush3.bf16.msra.mxu0 %v327_v4  ;;  %s854_s11 = scalar_lea.vmem %s1078_s6, 16 }
  0x23   : > { %777 = vmatprep.subr.bf16.mxu0 %v934_v0  ;;  %p855_p12 = scmp.ne.s32.totalorder %s1078_s6, %s854_s11 }
  0x25   : > { %353 = vrot.lane.b32.xlu1 %v332_v12, %s937_s12  ;;  %p856_p13 = pnand %p855_p12, %p1007_p4 }
  0x26   : > { %351 = vrot.lane.b32.xlu0 %v326_v8, %s937_s12 }
  0x27   : > { %p857_p0 = pneg %p856_p13 }
  0x29   : > { %357 = vrot.lane.b32.xlu1 %v333_v11, %s937_s12 }
  0x2a   : > { %355 = vrot.lane.b32.xlu0 %v327_v4, %s937_s12  ;;  %s858_s12 = sshll.u32 %s941_s18, 4  ;;  %s859_s12 = int_to_ptr.vmem [resolvable:$false] %s858_s12 }
  0x2b   : > { %s860_s13 = scalar_lea.vmem %s859_s12, 32  ;;  %p861_p1 = scmp.lt.s32.totalorder %s1078_s6, %s859_s12 }
  0x2c   : > { %p862_p2 = scmp.lt.s32.totalorder %s860_s13, %s854_s11 }
  0x2d   : > { %375 = vperm.xlu1 %852, %v367_v14  }
  0x2e   : > { %370 = vperm.xlu0 %851, %v366_v15   ;;  %p863_p3 = por %p862_p2, %p861_p1 }
  0x30   : > { %p864_p5 = pnand %p863_p3, %p857_p0 }
  0x8f   : > { %v343_v16 = vpop.permute.xlu1 %342 }
  0x90   : > { %v339_v17 = vpop.permute.xlu0 %338 }
  0x93   : > { %v345_v18 = vpop.permute.xlu1 %344 }
  0x94   : > { %v341_v19 = vpop.permute.xlu0 %340  ;;  %v348_v23 = vsel %vm346_vm1, %v343_v16, %v345_v18 }
  0x95   : > { %v347_v20 = vsel %vm346_vm1, %v339_v17, %v341_v19 }
  0x96   : > { %778 = vmatpush3.bf16.msra.mxu0 %v347_v20 }
  0x97   : > { %779 = vmatprep.subr.bf16.mxu0 %v934_v0  ;;  %v354_v21 = vpop.permute.xlu1 %353 }
  0x98   : > { %v352_v22 = vpop.permute.xlu0 %351 }
  0x99   : > { %v360_v24 = vsel %vm359_vm2, %v352_v22, %v354_v21 }
  0x9a   : > { %780 = vmatpush3.bf16.msra.mxu0 %v348_v23 }
  0x9b   : > { %781 = vmatprep.subr.bf16.mxu0 %v934_v0  ;;  %v358_v25 = vpop.permute.xlu1 %357 }
  0x9c   : > { %v356_v26 = vpop.permute.xlu0 %355 }
  0x9d   : > { %v361_v27 = vsel %vm359_vm2, %v356_v26, %v358_v25 }
  0x9e   : > { %782 = vmatpush3.bf16.msra.mxu0 %v360_v24 }
  0x9f   : > { %783 = vmatprep.subr.bf16.mxu0 %v934_v0 }
  0xa2   : > { %784 = vmatpush3.bf16.msra.mxu0 %v361_v27 }
  0xa5   : > { %786 = vmatmul.mubr.msk.bf16.vlgmr.msra.gmra.mrb[0].mxu0 %vm383_vm3, %v853_v28 }
  0xac   : > { %v376_v31 = vpop.permute.xlu1 %375 }
  0xad   : > { %v371_v29 = vpop.permute.xlu0 %370 }
 0x178   : > { %v421_v30 = vpop.f32.mrb[0].mxu0 }
 0x179   : > { %v422_v32 = vadd.f32 %v421_v30, %v371_v29  ;;  %v787_v33 = vpop.f32.mrb[1].mxu0 }
 0x17a   : > { %v424_v34 = vpop.f32.mrb[2].mxu0 }
 0x17b   : > { %v428_v35 = vmax.f32 %v422_v32, 0.0  ;;  %v425_v36 = vadd.f32 %v424_v34, %v376_v31  ;;  %v788_v37 = vpop.f32.mrb[3].mxu0 }
 0x17d   : > { %v429_v38 = vmax.f32 %v425_v36, 0.0  ;;  %v437_v39 = vsel %vm436_vm4, %v428_v35, -inf  ;;  %v940_v35 = vmov -inf   ;;  %v615_v36 = vand.u32 127, %v446_v41 }
 0x17e   : > { %438 = vmax.xlane.f32.xlu1 %v437_v39  ;;  %435 = vst.msk [vmem:[%s286_s30] sm:$0x1] %vm434_vm5, %v940_v35 }
 0x17f   : > { %v440_v40 = vsel %vm436_vm4, %v429_v38, -inf  ;;  %v620_v37 = vadd.s32 4294967288, %v615_v36  ;;  %v618_v38 = vsub.s32 %v615_v36, %v1040_v44 }
 0x180   : > { %441 = vmax.xlane.f32.xlu0 %v440_v40 }
 0x181   : > { %v623_v39 = vsub.s32 %v620_v37, %v1040_v44 }
 0x20b   : > { %v439_v54 = vpop.xlane.xlu1 %438 }
 0x20c   : > { %v449_v56 = vrot.slane %v439_v54, %v448_v46  ;;  %v453_v57 = vrot.slane %v439_v54, %v452_v47  ;;  %v457_v58 = vrot.slane %v439_v54, %v456_v48  ;;  %v461_v59 = vrot.slane %v439_v54, %v460_v49 }
 0x20d   : > { %v442_v60 = vpop.xlane.xlu0 %441  ;;  %v465_v61 = vrot.slane %v439_v54, %v464_v50  ;;  %v469_v62 = vrot.slane %v439_v54, %v468_v51  ;;  %v473_v63 = vrot.slane %v439_v54, %v472_v52  ;;  %v477_v0 = vrot.slane %v439_v54, %v476_v53 }
 0x20e   : > { %v510_v1 = vcombine.low %v449_v56, %v453_v57  ;;  %v511_v2 = vcombine.low %v457_v58, %v461_v59  ;;  %v481_v3 = vrot.slane %v442_v60, %v448_v46  ;;  %v485_v4 = vrot.slane %v442_v60, %v452_v47 }
 0x20f   : > { %v512_v5 = vcombine.low %v465_v61, %v469_v62  ;;  %v513_v6 = vcombine.low %v473_v63, %v477_v0  ;;  %v489_v7 = vrot.slane %v442_v60, %v456_v48  ;;  %v493_v8 = vrot.slane %v442_v60, %v460_v49  ;;  %v443_v48 = vld [vmem:[%s286_s30] sm:$0x1] }
 0x210   : > { %v520_v9 = vrot.slane %v510_v1, %v1051_v55  ;;  %v527_v10 = vrot.slane %v511_v2, %v1051_v55  ;;  %v497_v11 = vrot.slane %v442_v60, %v464_v50  ;;  %v501_v12 = vrot.slane %v442_v60, %v468_v51 }
 0x211   : > { %v534_v13 = vrot.slane %v512_v5, %v1051_v55  ;;  %v541_v14 = vrot.slane %v513_v6, %v1051_v55  ;;  %v505_v15 = vrot.slane %v442_v60, %v472_v52  ;;  %v509_v16 = vrot.slane %v442_v60, %v476_v53 }
 0x212   : > { %v542_v17 = vcombine.low %v520_v9, %v527_v10  ;;  %v559_v18 = vcombine.low %v481_v3, %v485_v4  ;;  %v560_v19 = vcombine.low %v489_v7, %v493_v8  ;;  %v561_v20 = vcombine.low %v497_v11, %v501_v12 }
 0x213   : > { %v543_v21 = vcombine.low %v534_v13, %v541_v14  ;;  %v562_v22 = vcombine.low %v505_v15, %v509_v16 }
 0x214   : > { %v550_v23 = vrot.slane %v542_v17, %v1051_v55  ;;  %v569_v24 = vrot.slane %v559_v18, %v1051_v55  ;;  %v576_v25 = vrot.slane %v560_v19, %v1051_v55  ;;  %v583_v26 = vrot.slane %v561_v20, %v1051_v55 }
 0x215   : > { %v557_v27 = vrot.slane %v543_v21, %v1051_v55  ;;  %v590_v28 = vrot.slane %v562_v22, %v1051_v55 }
 0x216   : > { %v591_v29 = vcombine.low %v569_v24, %v576_v25 }
 0x217   : > { %v558_v30 = vcombine.low %v550_v23, %v557_v27  ;;  %v592_v31 = vcombine.low %v583_v26, %v590_v28 }
 0x218   : > { %v599_v32 = vrot.slane %v591_v29, %v1051_v55 }
 0x219   : > { %609 = vperm.xlu0 %851, %v558_v30   ;;  %v606_v33 = vrot.slane %v592_v31, %v1051_v55 }
 0x21b   : > { %v607_v34 = vcombine.low %v599_v32, %v606_v33 }
 0x21d   : > { %612 = vperm.xlu1 %852, %v607_v34  }
 0x298   : > { %v610_v40 = vpop.permute.xlu0 %609 }
 0x299   : > { %v619_v43 = vrot.slane %v610_v40, %v618_v38 }
 0x29c   : > { %v613_v42 = vpop.permute.xlu1 %612 }
 0x29d   : > { %v624_v45 = vrot.slane %v613_v42, %v623_v39 }
 0x29f   : > { %v626_v46 = vsel %vm625_vm6, %v624_v45, %v619_v43 }
 0x2a0   : > { %v633_v47 = vrot.slane %v626_v46, %v1051_v55 }
 0x2a2   : > { %v640_v49 = vrot.slane %v633_v47, %v1051_v55 }
 0x2a4   : > { %v642_v41 = vmax.f32 %v443_v48, %v640_v49 }
 0x2a6   : > { %644 = vst.msk [vmem:[%s286_s30] sm:$0x1] %vm434_vm5, %v642_v41 }
 0x2a7   : > { %867 = shalt.err (!%p864_p5)
}
 0x2a8   : > { %s868_s14 = scalar_lea.hbm %s1076_s9, 16  ;;  %s872_s24 = scalar_lea.hbm %s1128_s4, 32 }
 0x2a9   : > { %p869_p6 = scmp.ne.s32.totalorder %s1076_s9, %s868_s14  ;;  %p873_p10 = scmp.lt.u32.totalorder %s1076_s9, %s1128_s4 }
 0x2aa   : > { %p874_p11 = scmp.lt.u32.totalorder %s872_s24, %s868_s14  ;;  %p876_p13 = scmp.lt.u32.totalorder %s868_s14, %s1076_s9 }
 0x2ab   : > { %p870_p7 = pnand %p869_p6, %p1007_p4 }
 0x2ac   : > { %p875_p12 = por %p874_p11, %p873_p10 }
 0x2ad   : > { %p871_p9 = pneg %p870_p7 }
 0x2ae   : > { %p877_p0 = por %p876_p13, %p875_p12 }
 0x2b0   : > { %p878_p1 = pnand %p877_p0, %p871_p9 }
 0x2b2   : > { %881 = shalt.err (!%p878_p1)
}
 0x2b3   : > { %789 = dma.vmem_to_hbm [thread:$0]  (%p1007_p4), %s1078_s6, 16, %s1076_s9, %s646_s10  }
 0x2b4 PF: > { %p795_p2 = scmp.ge.s32.totalorder %s932_s20, 2  ;;  %s671_s30 = sand.u32 1, %s912_s15  }
 0x2b5   : > { %s672_s5 = scalar_lea.sflag [#allocation3], %s671_s30 }
 0x2b6   : > { %p792_p3 = pnand %p795_p2, %p1014_p8 }
 0x2b8   : > { %907 = dma.done.wait (!%p792_p3), %s672_s5, 16  }
 0x2b9   : > { %909 = vsyncadd (!%p792_p3), %s672_s5, 4294967280  ;;  %s17_s20 = sadd.s32 1, %s932_s20   ;;  %s1131_s15 = smov %s916_s16 }
 0x2ba   : > { %p14_p5 = scmp.ge.s32.totalorder %s17_s20, 4   ;;  %s1132_s16 = smov %s920_s17 }
 0x2bb   : > { %s1133_s17 = smov %s1020_s28  ;;  %s1134_s18 = smov %s928_s19 }
 0x2bc   : > { %s1135_s19 = smov %s1137_s23  ;;  %16 = sbr.rel (!%p14_p5) target bundleno = 4 (0x4), region = 78 }
 0x2c3   :  { %676 = vsyncpa [#allocation3], 1 }
 0x2c4   :  { %678 = vsyncpa [#allocation3 + $0x1], 1 }

</bundles_post_ra>
